<compile_context>
chip_gen: v5e
topology: v5e:2x2
jax: 0.10.0
libtpu: 0.0.40
codegen_flags: <defaults>
</compile_context>

<pallas_src>
import functools

import jax
import jax.numpy as jnp
from jax import lax
from jax.experimental import pallas as pl
from jax.experimental.pallas import tpu as pltpu

JITTER = 1e-6


def _softplus(z):
    # numerically stable softplus: max(z, 0) + log1p(exp(-|z|))
    return jnp.maximum(z, 0.0) + jnp.log1p(jnp.exp(-jnp.abs(z)))


def _round_up(n, m):
    return ((n + m - 1) // m) * m


def deep_normal_kernel(
    x_ref,     # [tb, D]  input tile, natural [batch, feature] layout (f32)
    we_ref,    # [H, D]   embedding weight (torch [out,in] layout, maybe bf16)
    w1_ref,    # [2H, H]  fused (mean||std) hidden weights (maybe bf16)
    bh_ref,    # [3H, 1]  packed biases: be [0:H], bm1 [H:2H], bs1 [2H:3H] (f32)
    w2_ref,    # [2H, 1]  fused (mean||std) H->1 head weights as a column (f32)
    b2_ref,    # [2, 1]   head biases: row 0 = mean, row 1 = std (f32)
    out_ref,   # [2, tb]  row 0 = mean, row 1 = std (f32, lane-dense)
):
    H = we_ref.shape[0]

    # embedding = Dropout(ReLU(We @ x^T + be))   (dropout = identity, eval).
    # Contract the D axes of we [H,D] and x [tb,D] directly -> [H, tb];
    # the tiny transpose of the x tile happens in VMEM, not in HBM.
    x = x_ref[...].astype(we_ref.dtype)                 # in-kernel MXU cast
    emb = lax.dot_general(
        we_ref[...], x,
        dimension_numbers=(((1,), (1,)), ((), ())),
        preferred_element_type=jnp.float32)             # [H, tb] f32
    emb = jnp.maximum(emb + bh_ref[0:H, :], 0.0)

    # Fused mean/std hidden layers: one [2H,H] @ [H,tb] MXU matmul.
    h = jnp.dot(w1_ref[...], emb.astype(w1_ref.dtype),
                preferred_element_type=jnp.float32)      # [2H, tb] f32
    h = jnp.maximum(h + bh_ref[H:, :], 0.0)

    # H->1 heads: one VPU multiply against the packed head column, then two
    # half-height cross-sublane sums (XLU slot, overlaps with MXU/VPU) —
    # avoids degenerate N=1 MXU matmuls.
    weighted = h * w2_ref[...]                           # [2H, tb]
    mean_row = jnp.sum(weighted[:H], axis=0, keepdims=True) + b2_ref[0:1, :]
    zs_row = jnp.sum(weighted[H:], axis=0, keepdims=True) + b2_ref[1:2, :]
    std_row = _softplus(zs_row) + JITTER

    # Single lane-dense store of the whole [2, tb] output slab.
    out_ref[...] = jnp.concatenate([mean_row, std_row], axis=0).astype(out_ref.dtype)


@functools.partial(jax.jit, static_argnames=("block_b", "mxu_dtype"))
def deep_normal_forward(x, params, block_b=2048, mxu_dtype=jnp.float32):
    """Returns (mean, std) of the predicted Normal distribution.

    x: [B, input_size] float32
    params: dict of weights in PyTorch nn.Linear layout ([out, in] weights,
            1-D biases); see init_params.
    block_b: target batch tile (lane) size; 1024-4096 recommended (sweep),
             rounded to a multiple of 128 and capped so the grid has >= 2
             steps when B allows (v7x megacore).
    mxu_dtype: dtype fed to the MXU dots (weights cast once in the wrapper,
               x tile cast in-kernel); element-wise math stays f32.
    """
    B, D = x.shape
    H = params["we"].shape[0]

    # Batch lives on lanes inside the kernel -> tile must be a multiple of 128.
    tb_cap = _round_up(pl.cdiv(B, 2), 128)   # aim for grid >= 2 (v7x: 2 TCs)
    tb = max(128, min(_round_up(block_b, 128), tb_cap))
    grid = (pl.cdiv(B, tb),)                 # ragged last tile handled by Pallas

    # One-time casts / packing of the tiny weights (x is untouched in HBM).
    we = params["we"].astype(mxu_dtype)                                  # [H, D]
    w1 = jnp.concatenate([params["wm1"], params["ws1"]], axis=0).astype(mxu_dtype)  # [2H, H]
    bh = jnp.concatenate([params["be"], params["bm1"], params["bs1"]]).reshape(3 * H, 1)
    w2 = jnp.concatenate([params["wm2"].reshape(H, 1),
                          params["ws2"].reshape(H, 1)], axis=0)          # [2H, 1]
    b2 = jnp.concatenate([params["bm2"], params["bs2"]]).reshape(2, 1)   # [2, 1]

    full = lambda i: (0, 0)        # weights/biases: same block every grid step

    in_specs = [
        pl.BlockSpec((tb, D), lambda i: (i, 0)),   # x, streamed straight from HBM
        pl.BlockSpec((H, D), full),                # we
        pl.BlockSpec((2 * H, H), full),            # w1 (fused)
        pl.BlockSpec((3 * H, 1), full),            # bh (packed hidden biases)
        pl.BlockSpec((2 * H, 1), full),            # w2 (fused head column)
        pl.BlockSpec((2, 1), full),                # b2 (packed head biases)
    ]
    out_specs = pl.BlockSpec((2, tb), lambda i: (0, i))
    out_shape = jax.ShapeDtypeStruct((2, B), jnp.float32)

    out = pl.pallas_call(
        deep_normal_kernel,
        out_shape=out_shape,
        grid_spec=pltpu.PrefetchScalarGridSpec(
            num_scalar_prefetch=0,
            grid=grid,
            in_specs=in_specs,
            out_specs=out_specs,
        ),
        compiler_params=pltpu.CompilerParams(
            dimension_semantics=("parallel",),
        ),
    )(x, we, w1, bh, w2, b2)

    mean = out[0, :].reshape(B, 1)
    std = out[1, :].reshape(B, 1)
    return mean, std


def init_params(key, input_size, hidden_size):
    """Deterministic synthetic parameters in PyTorch nn.Linear layout
    (weights [out_features, in_features], biases 1-D)."""
    keys = jax.random.split(key, 10)
    s = 0.1
    return {
        "we":  s * jax.random.normal(keys[0], (hidden_size, input_size), jnp.float32),
        "be":  s * jax.random.normal(keys[1], (hidden_size,), jnp.float32),
        "wm1": s * jax.random.normal(keys[2], (hidden_size, hidden_size), jnp.float32),
        "bm1": s * jax.random.normal(keys[3], (hidden_size,), jnp.float32),
        "wm2": s * jax.random.normal(keys[4], (1, hidden_size), jnp.float32),
        "bm2": s * jax.random.normal(keys[5], (1,), jnp.float32),
        "ws1": s * jax.random.normal(keys[6], (hidden_size, hidden_size), jnp.float32),
        "bs1": s * jax.random.normal(keys[7], (hidden_size,), jnp.float32),
        "ws2": s * jax.random.normal(keys[8], (1, hidden_size), jnp.float32),
        "bs2": s * jax.random.normal(keys[9], (1,), jnp.float32),
    }


def reference_forward(x, p):
    """Pure-JAX reference mirroring the PyTorch module (eval-mode dropout)."""
    emb = jax.nn.relu(x @ p["we"].T + p["be"])
    hm = jax.nn.relu(emb @ p["wm1"].T + p["bm1"])
    mean = hm @ p["wm2"].T + p["bm2"]
    hs = jax.nn.relu(emb @ p["ws1"].T + p["bs1"])
    std = jax.nn.softplus(hs @ p["ws2"].T + p["bs2"]) + JITTER
    return mean, std


if __name__ == "__main__":
    B, INPUT_SIZE, HIDDEN_SIZE = 8, 16, 32

    key = jax.random.PRNGKey(0)
    k_x, k_p, k_x2 = jax.random.split(key, 3)
    x = jax.random.normal(k_x, (B, INPUT_SIZE), jnp.float32)
    params = init_params(k_p, INPUT_SIZE, HIDDEN_SIZE)

    mean_ref, std_ref = reference_forward(x, params)

    # f32 path (exact check against the reference), single ragged tile.
    mean, std = deep_normal_forward(x, params)
    jax.block_until_ready((mean, std))
    assert mean.shape == (B, 1) and std.shape == (B, 1)
    assert jnp.allclose(mean, mean_ref, atol=1e-5, rtol=1e-5)
    assert jnp.allclose(std, std_ref, atol=1e-5, rtol=1e-5)
    assert bool(jnp.all(std > 0.0))

    # Multi-tile path: B=300 -> tb=256, grid=2 with a ragged last tile.
    B2 = 300
    x2 = jax.random.normal(k_x2, (B2, INPUT_SIZE), jnp.float32)
    mean2_ref, std2_ref = reference_forward(x2, params)
    mean2, std2 = deep_normal_forward(x2, params, block_b=2048)
    jax.block_until_ready((mean2, std2))
    assert mean2.shape == (B2, 1) and std2.shape == (B2, 1)
    assert jnp.allclose(mean2, mean2_ref, atol=1e-5, rtol=1e-5)
    assert jnp.allclose(std2, std2_ref, atol=1e-5, rtol=1e-5)
    assert bool(jnp.all(std2 > 0.0))

    # bf16 MXU-input path (weights cast in wrapper, x cast in-kernel);
    # element-wise math stays f32.
    mean_bf, std_bf = deep_normal_forward(x, params, mxu_dtype=jnp.bfloat16)
    jax.block_until_ready((mean_bf, std_bf))
    assert jnp.allclose(mean_bf, mean_ref, atol=1e-1, rtol=1e-1)
    assert jnp.allclose(std_bf, std_ref, atol=1e-1, rtol=1e-1)
    assert bool(jnp.all(std_bf > 0.0))

    print("KERNEL_OK")
</pallas_src>

<mosaic_0001>
module attributes {stable_mosaic.version = 11 : i64} {
  func.func @deep_normal_kernel(%arg0: i32, %arg1: memref<128x16xf32, #tpu.memory_space<vmem>>, %arg2: memref<32x16xf32, #tpu.memory_space<vmem>>, %arg3: memref<64x32xf32, #tpu.memory_space<vmem>>, %arg4: memref<96x1xf32, #tpu.memory_space<vmem>>, %arg5: memref<64x1xf32, #tpu.memory_space<vmem>>, %arg6: memref<2x1xf32, #tpu.memory_space<vmem>>, %arg7: memref<2x128xf32, #tpu.memory_space<vmem>>) attributes {dimension_semantics = [#tpu.dimension_semantics<parallel>], iteration_bounds = array<i64: 1>, scalar_prefetch = 0 : i64, scratch_operands = 0 : i64, tpu.core_type = #tpu.core_type<tc>, window_params = [{transform_indices = @transform_0, window_bounds = array<i64: 128, 16>}, {pipeline_mode = #tpu.pipeline_mode<synchronous>, transform_indices = @transform_1, window_bounds = array<i64: 32, 16>}, {pipeline_mode = #tpu.pipeline_mode<synchronous>, transform_indices = @transform_2, window_bounds = array<i64: 64, 32>}, {pipeline_mode = #tpu.pipeline_mode<synchronous>, transform_indices = @transform_3, window_bounds = array<i64: 96, 1>}, {pipeline_mode = #tpu.pipeline_mode<synchronous>, transform_indices = @transform_4, window_bounds = array<i64: 64, 1>}, {pipeline_mode = #tpu.pipeline_mode<synchronous>, transform_indices = @transform_5, window_bounds = array<i64: 2, 1>}, {transform_indices = @transform_6, window_bounds = array<i64: 2, 128>}]} {
    %c0 = arith.constant 0 : index
    %c0_0 = arith.constant 0 : index
    %0 = vector.load %arg1[%c0, %c0_0] : memref<128x16xf32, #tpu.memory_space<vmem>>, vector<128x16xf32>
    %c0_1 = arith.constant 0 : index
    %c0_2 = arith.constant 0 : index
    %1 = vector.load %arg2[%c0_1, %c0_2] : memref<32x16xf32, #tpu.memory_space<vmem>>, vector<32x16xf32>
    %cst = arith.constant dense<0.000000e+00> : vector<32x128xf32>
    %2 = tpu.matmul %1, %0, %cst {dimension_numbers = #tpu.dot_dimension_numbers<[1], [1], [0], [0], [0, 0, 1, 0], [], []>} : vector<32x16xf32>, vector<128x16xf32>, vector<32x128xf32> -> vector<32x128xf32>
    %c0_3 = arith.constant 0 : index
    %c0_4 = arith.constant 0 : index
    %3 = vector.load %arg4[%c0_3, %c0_4] : memref<96x1xf32, #tpu.memory_space<vmem>>, vector<32x1xf32>
    %4 = vector.broadcast %3 : vector<32x1xf32> to vector<32x128xf32>
    %5 = arith.addf %2, %4 : vector<32x128xf32>
    %cst_5 = arith.constant 0.000000e+00 : f32
    %6 = vector.broadcast %cst_5 : f32 to vector<32x128xf32>
    %7 = arith.maximumf %5, %6 : vector<32x128xf32>
    %c0_6 = arith.constant 0 : index
    %c0_7 = arith.constant 0 : index
    %8 = vector.load %arg3[%c0_6, %c0_7] : memref<64x32xf32, #tpu.memory_space<vmem>>, vector<64x32xf32>
    %cst_8 = arith.constant dense<0.000000e+00> : vector<64x128xf32>
    %9 = tpu.matmul %8, %7, %cst_8 {dimension_numbers = #tpu.dot_dimension_numbers<[1], [0], [0], [1], [0, 0, 1, 1], [], []>} : vector<64x32xf32>, vector<32x128xf32>, vector<64x128xf32> -> vector<64x128xf32>
    %c32 = arith.constant 32 : index
    %c0_9 = arith.constant 0 : index
    %10 = vector.load %arg4[%c32, %c0_9] : memref<96x1xf32, #tpu.memory_space<vmem>>, vector<64x1xf32>
    %11 = vector.broadcast %10 : vector<64x1xf32> to vector<64x128xf32>
    %12 = arith.addf %9, %11 : vector<64x128xf32>
    %cst_10 = arith.constant 0.000000e+00 : f32
    %13 = vector.broadcast %cst_10 : f32 to vector<64x128xf32>
    %14 = arith.maximumf %12, %13 : vector<64x128xf32>
    %c0_11 = arith.constant 0 : index
    %c0_12 = arith.constant 0 : index
    %15 = vector.load %arg5[%c0_11, %c0_12] : memref<64x1xf32, #tpu.memory_space<vmem>>, vector<64x1xf32>
    %16 = vector.broadcast %15 : vector<64x1xf32> to vector<64x128xf32>
    %17 = arith.mulf %14, %16 : vector<64x128xf32>
    %18 = vector.extract_strided_slice %17 {offsets = [0, 0], sizes = [32, 128], strides = [1, 1]} : vector<64x128xf32> to vector<32x128xf32>
    %cst_13 = arith.constant dense<0.000000e+00> : vector<128xf32>
    %19 = vector.multi_reduction <add>, %18, %cst_13 [0] : vector<32x128xf32> to vector<128xf32>
    %20 = vector.shape_cast %19 : vector<128xf32> to vector<1x128xf32>
    %c0_14 = arith.constant 0 : index
    %c0_15 = arith.constant 0 : index
    %21 = vector.load %arg6[%c0_14, %c0_15] : memref<2x1xf32, #tpu.memory_space<vmem>>, vector<1x1xf32>
    %22 = vector.broadcast %21 : vector<1x1xf32> to vector<1x128xf32>
    %23 = arith.addf %20, %22 : vector<1x128xf32>
    %24 = vector.extract_strided_slice %17 {offsets = [32, 0], sizes = [32, 128], strides = [1, 1]} : vector<64x128xf32> to vector<32x128xf32>
    %cst_16 = arith.constant dense<0.000000e+00> : vector<128xf32>
    %25 = vector.multi_reduction <add>, %24, %cst_16 [0] : vector<32x128xf32> to vector<128xf32>
    %26 = vector.shape_cast %25 : vector<128xf32> to vector<1x128xf32>
    %c1 = arith.constant 1 : index
    %c0_17 = arith.constant 0 : index
    %27 = vector.load %arg6[%c1, %c0_17] : memref<2x1xf32, #tpu.memory_space<vmem>>, vector<1x1xf32>
    %28 = vector.broadcast %27 : vector<1x1xf32> to vector<1x128xf32>
    %29 = arith.addf %26, %28 : vector<1x128xf32>
    %cst_18 = arith.constant 0.000000e+00 : f32
    %30 = vector.broadcast %cst_18 : f32 to vector<1x128xf32>
    %31 = arith.maximumf %29, %30 : vector<1x128xf32>
    %32 = math.absf %29 : vector<1x128xf32>
    %cst_19 = arith.constant 0.000000e+00 : f32
    %33 = vector.broadcast %cst_19 : f32 to vector<1x128xf32>
    %34 = arith.subf %33, %32 : vector<1x128xf32>
    %35 = math.exp %34 : vector<1x128xf32>
    %36 = math.log1p %35 : vector<1x128xf32>
    %37 = arith.addf %31, %36 : vector<1x128xf32>
    %cst_20 = arith.constant 9.99999997E-7 : f32
    %38 = vector.broadcast %cst_20 : f32 to vector<1x128xf32>
    %39 = arith.addf %37, %38 : vector<1x128xf32>
    %40 = tpu.concatenate %23, %39 in 0 : vector<1x128xf32>, vector<1x128xf32> -> vector<2x128xf32>
    %c0_21 = arith.constant 0 : index
    %c0_22 = arith.constant 0 : index
    %41 = vector.load %arg7[%c0_21, %c0_22] : memref<2x128xf32, #tpu.memory_space<vmem>>, vector<2x128xf32>
    tpu.vector_store %arg7[%c0_21, %c0_22], %40 {strides = array<i32>} : memref<2x128xf32, #tpu.memory_space<vmem>>, vector<2x128xf32>,
    return
  }
  func.func @transform_0(%arg0: i32) -> (i32, i32) {
    %c0_i32 = arith.constant 0 : i32
    %c0_i32_0 = arith.constant 0 : i32
    return %arg0, %c0_i32 : i32, i32
  }
  func.func @transform_1(%arg0: i32) -> (i32, i32) {
    %c0_i32 = arith.constant 0 : i32
    %c0_i32_0 = arith.constant 0 : i32
    %c0_i32_1 = arith.constant 0 : i32
    return %c0_i32, %c0_i32_0 : i32, i32
  }
  func.func @transform_2(%arg0: i32) -> (i32, i32) {
    %c0_i32 = arith.constant 0 : i32
    %c0_i32_0 = arith.constant 0 : i32
    %c0_i32_1 = arith.constant 0 : i32
    return %c0_i32, %c0_i32_0 : i32, i32
  }
  func.func @transform_3(%arg0: i32) -> (i32, i32) {
    %c0_i32 = arith.constant 0 : i32
    %c0_i32_0 = arith.constant 0 : i32
    %c0_i32_1 = arith.constant 0 : i32
    return %c0_i32, %c0_i32_0 : i32, i32
  }
  func.func @transform_4(%arg0: i32) -> (i32, i32) {
    %c0_i32 = arith.constant 0 : i32
    %c0_i32_0 = arith.constant 0 : i32
    %c0_i32_1 = arith.constant 0 : i32
    return %c0_i32, %c0_i32_0 : i32, i32
  }
  func.func @transform_5(%arg0: i32) -> (i32, i32) {
    %c0_i32 = arith.constant 0 : i32
    %c0_i32_0 = arith.constant 0 : i32
    %c0_i32_1 = arith.constant 0 : i32
    return %c0_i32, %c0_i32_0 : i32, i32
  }
  func.func @transform_6(%arg0: i32) -> (i32, i32) {
    %c0_i32 = arith.constant 0 : i32
    %c0_i32_0 = arith.constant 0 : i32
    return %c0_i32, %arg0 : i32, i32
  }
}

</mosaic_0001>

<bundles_post_ra>
// kernel: deep_normal_forward.1
= control target key start
LH: loop header
LB: loop body
LE: loop exit
PB: predicated region body
PF: predicated region fallthrough
CT: control target
= control target key end

     0   :  { %vm67_vm0 = vcmask 130048   ;;  %v473_v1 = vmov 0   ;;  %vm217_vm1 = vcmask 261120   ;;  %vm398_vm3 = vcmask 1040384   ;;  %s722_s0 = inlined_call_operand.vmem [shape: f32[8,16], index: 0, kind: input, shape index: {}]   ;;  %s723_s3 = inlined_call_operand.vmem [shape: f32[96,1], index: 3, kind: input, shape index: {}]   ;;  %s724_s4 = inlined_call_operand.vmem [shape: f32[64,1], index: 4, kind: input, shape index: {}]   ;;  %s725_s5 = inlined_call_operand.vmem [shape: f32[2,1], index: 5, kind: input, shape index: {}]   ;;  %s726_s1 = inlined_call_operand.vmem [shape: f32[32,16], index: 1, kind: input, shape index: {}]   ;;  %s727_s2 = inlined_call_operand.vmem [shape: f32[64,32], index: 2, kind: input, shape index: {}]   ;;  %s728_s6 = inlined_call_operand.vmem [shape: f32[2,8], index: 6, kind: output, shape index: {}]  }
   0x1   :  { %v38_v0 = vld [vmem:[%s722_s0 + $0x78] sm:$0xff]  ;;  %466 = vset.pattern.permute.xlu0 %v473_v1  ;;  %467 = vset.pattern.permute.xlu1 %v473_v1  ;;  %v37_v2 = vld [vmem:[%s722_s0 + $0x70] sm:$0xff]  ;;  %v44_v4 = vld [vmem:[%s723_s3 + $0x8] sm:$0xff] }
   0x2   :  { %434 = vmatpush.xpose.msk.msra.mxu3 %vm67_vm0, %v38_v0  ;;  %433 = vmatpush.xpose.msk.msra.mxu2 %vm67_vm0, %v38_v0  ;;  %v46_v3 = vld [vmem:[%s723_s3 + $0x18] sm:$0xff]  ;;  %v36_v5 = vld [vmem:[%s722_s0 + $0x68] sm:$0xff]  ;;  %v45_v6 = vld [vmem:[%s723_s3 + $0x10] sm:$0xff] }
   0x3   :  { %405 = vmatpush.xpose.msk.msra.mxu0 %vm67_vm0, %v38_v0  ;;  %468 = vset.pattern.permute.xlu2 %v473_v1  ;;  %v35_v7 = vld [vmem:[%s722_s0 + $0x60] sm:$0xff]  ;;  %v34_v9 = vld [vmem:[%s722_s0 + $0x58] sm:$0xff]  ;;  %v33_v11 = vld [vmem:[%s722_s0 + $0x50] sm:$0xff] }
   0x4   :  { %64 = vperm.xlu0 %466, %v46_v3   ;;  %54 = vperm.xlu1 %467, %v44_v4   ;;  %v43_v8 = vld [vmem:[%s723_s3] sm:$0xff]  ;;  %v174_v12 = vld [vmem:[%s723_s3 + $0x48] sm:$0xff]  ;;  %v176_v14 = vld [vmem:[%s723_s3 + $0x58] sm:$0xff] }
   0x5   :  { %v173_v10 = vld [vmem:[%s723_s3 + $0x40] sm:$0xff]  ;;  %v32_v13 = vld [vmem:[%s722_s0 + $0x48] sm:$0xff]  ;;  %v30_v17 = vld [vmem:[%s722_s0 + $0x38] sm:$0xff] }
   0x6   :  { %436 = vmatpush.xpose.msk.msra.mxu3 %vm67_vm0, %v37_v2  ;;  %435 = vmatpush.xpose.msk.msra.mxu2 %vm67_vm0, %v37_v2  ;;  %v31_v15 = vld [vmem:[%s722_s0 + $0x40] sm:$0xff]  ;;  %v297_v18 = vld [vmem:[%s724_s4 + $0x30] sm:$0xff]  ;;  %v298_v20 = vld [vmem:[%s724_s4 + $0x38] sm:$0xff] }
   0x7   :  { %406 = vmatpush.xpose.msk.msra.mxu0 %vm67_vm0, %v37_v2  ;;  %v295_v16 = vld [vmem:[%s724_s4 + $0x20] sm:$0xff]  ;;  %v29_v19 = vld [vmem:[%s722_s0 + $0x30] sm:$0xff]  ;;  %v28_v21 = vld [vmem:[%s722_s0 + $0x28] sm:$0xff] }
   0x8   :  { %v171_v22 = vld [vmem:[%s723_s3 + $0x30] sm:$0xff]  ;;  %v27_v23 = vld [vmem:[%s722_s0 + $0x20] sm:$0xff]  ;;  %v172_v24 = vld [vmem:[%s723_s3 + $0x38] sm:$0xff] }
   0x9   :  { %v26_v25 = vld [vmem:[%s722_s0 + $0x18] sm:$0xff]  ;;  %v292_v26 = vld [vmem:[%s724_s4 + $0x8] sm:$0xff]  ;;  %v25_v27 = vld [vmem:[%s722_s0 + $0x10] sm:$0xff] }
   0xa   :  { %438 = vmatpush.xpose.msk.msra.mxu3 %vm67_vm0, %v36_v5  ;;  %437 = vmatpush.xpose.msk.msra.mxu2 %vm67_vm0, %v36_v5  ;;  %v293_v28 = vld [vmem:[%s724_s4 + $0x10] sm:$0xff]  ;;  %v24_v29 = vld [vmem:[%s722_s0 + $0x8] sm:$0xff]  ;;  %v356_v30 = vld [vmem:[%s725_s5] sm:$0x1] }
   0xb   :  { %407 = vmatpush.xpose.msk.msra.mxu0 %vm67_vm0, %v36_v5  ;;  %v23_v31 = vld [vmem:[%s722_s0] sm:$0xff]  ;;  %v41_v32 = vld [vmem:[%s726_s1 + $0x10] sm:$0xff]  ;;  %v40_v33 = vld [vmem:[%s726_s1 + $0x8] sm:$0xff] }
   0xc   :  { %59 = vperm.xlu0 %466, %v45_v6   ;;  %49 = vperm.xlu1 %467, %v43_v8   ;;  %v39_v34 = vld [vmem:[%s726_s1] sm:$0xff]  ;;  %v42_v35 = vld [vmem:[%s726_s1 + $0x18] sm:$0xff]  ;;  %v170_v37 = vld [vmem:[%s723_s3 + $0x28] sm:$0xff] }
   0xd   :  { %v169_v36 = vld [vmem:[%s723_s3 + $0x20] sm:$0xff]  ;;  %v175_v39 = vld [vmem:[%s723_s3 + $0x50] sm:$0xff]  ;;  %v296_v43 = vld [vmem:[%s724_s4 + $0x28] sm:$0xff] }
   0xe   :  { %440 = vmatpush.xpose.msk.msra.mxu3 %vm67_vm0, %v35_v7  ;;  %439 = vmatpush.xpose.msk.msra.mxu2 %vm67_vm0, %v35_v7  ;;  %v372_v55 = vld [vmem:[%s725_s5 + $0x1] sm:$0x1]  ;;  %v162_v59 = vld [vmem:[%s727_s2 + $0x8] sm:$0xff]  ;;  %v163_v60 = vld [vmem:[%s727_s2 + $0x10] sm:$0xff] }
   0xf   :  { %408 = vmatpush.xpose.msk.msra.mxu0 %vm67_vm0, %v35_v7  ;;  %179 = vperm.xlu2 %468, %v169_v36   ;;  %v161_v57 = vld [vmem:[%s727_s2] sm:$0xff]  ;;  %v164_v61 = vld [vmem:[%s727_s2 + $0x18] sm:$0xff]  ;;  %v166_v0 = vld [vmem:[%s727_s2 + $0x28] sm:$0xff] }
  0x10   :  { %v291_v58 = vld [vmem:[%s724_s4] sm:$0xff]  ;;  %v294_v62 = vld [vmem:[%s724_s4 + $0x18] sm:$0xff]  ;;  %v167_v1 = vld [vmem:[%s727_s2 + $0x30] sm:$0xff] }
  0x11   :  { %v165_v63 = vld [vmem:[%s727_s2 + $0x20] sm:$0xff]  ;;  %v168_v2 = vld [vmem:[%s727_s2 + $0x38] sm:$0xff] }
  0x12   :  { %442 = vmatpush.xpose.msk.msra.mxu3 %vm67_vm0, %v34_v9  ;;  %441 = vmatpush.xpose.msk.msra.mxu2 %vm67_vm0, %v34_v9 }
  0x13   :  { %409 = vmatpush.xpose.msk.msra.mxu0 %vm67_vm0, %v34_v9 }
  0x14   :  { %199 = vperm.xlu0 %466, %v173_v10   ;;  %204 = vperm.xlu1 %467, %v174_v12  }
  0x16   :  { %444 = vmatpush.xpose.msk.msra.mxu3 %vm67_vm0, %v33_v11  ;;  %443 = vmatpush.xpose.msk.msra.mxu2 %vm67_vm0, %v33_v11 }
  0x17   :  { %410 = vmatpush.xpose.msk.msra.mxu0 %vm67_vm0, %v33_v11  ;;  %184 = vperm.xlu2 %468, %v170_v37  }
  0x1a   :  { %446 = vmatpush.xpose.msk.msra.mxu3 %vm67_vm0, %v32_v13  ;;  %445 = vmatpush.xpose.msk.msra.mxu2 %vm67_vm0, %v32_v13 }
  0x1b   :  { %411 = vmatpush.xpose.msk.msra.mxu0 %vm67_vm0, %v32_v13 }
  0x1c   :  { %214 = vperm.xlu0 %466, %v176_v14   ;;  %321 = vperm.xlu1 %467, %v295_v16  }
  0x1e   :  { %448 = vmatpush.xpose.msk.msra.mxu3 %vm67_vm0, %v31_v15  ;;  %447 = vmatpush.xpose.msk.msra.mxu2 %vm67_vm0, %v31_v15 }
  0x1f   :  { %412 = vmatpush.xpose.msk.msra.mxu0 %vm67_vm0, %v31_v15  ;;  %209 = vperm.xlu2 %468, %v175_v39  }
  0x22   :  { %450 = vmatpush.xpose.msk.msra.mxu3 %vm67_vm0, %v30_v17  ;;  %449 = vmatpush.xpose.msk.msra.mxu2 %vm67_vm0, %v30_v17 }
  0x23   :  { %413 = vmatpush.xpose.msk.msra.mxu0 %vm67_vm0, %v30_v17 }
  0x24   :  { %331 = vperm.xlu0 %466, %v297_v18   ;;  %336 = vperm.xlu1 %467, %v298_v20  }
  0x26   :  { %452 = vmatpush.xpose.msk.msra.mxu3 %vm67_vm0, %v29_v19  ;;  %451 = vmatpush.xpose.msk.msra.mxu2 %vm67_vm0, %v29_v19 }
  0x27   :  { %414 = vmatpush.xpose.msk.msra.mxu0 %vm67_vm0, %v29_v19  ;;  %326 = vperm.xlu2 %468, %v296_v43  }
  0x2a   :  { %454 = vmatpush.xpose.msk.msra.mxu3 %vm67_vm0, %v28_v21  ;;  %453 = vmatpush.xpose.msk.msra.mxu2 %vm67_vm0, %v28_v21 }
  0x2b   :  { %415 = vmatpush.xpose.msk.msra.mxu0 %vm67_vm0, %v28_v21 }
  0x2c   :  { %189 = vperm.xlu0 %466, %v171_v22   ;;  %194 = vperm.xlu1 %467, %v172_v24  }
  0x2e   :  { %456 = vmatpush.xpose.msk.msra.mxu3 %vm67_vm0, %v27_v23  ;;  %455 = vmatpush.xpose.msk.msra.mxu2 %vm67_vm0, %v27_v23 }
  0x2f   :  { %416 = vmatpush.xpose.msk.msra.mxu0 %vm67_vm0, %v27_v23  ;;  %375 = vperm.xlu2 %468, %v372_v55  }
  0x32   :  { %458 = vmatpush.xpose.msk.msra.mxu3 %vm67_vm0, %v26_v25  ;;  %457 = vmatpush.xpose.msk.msra.mxu2 %vm67_vm0, %v26_v25 }
  0x33   :  { %417 = vmatpush.xpose.msk.msra.mxu0 %vm67_vm0, %v26_v25 }
  0x34   :  { %306 = vperm.xlu0 %466, %v292_v26   ;;  %311 = vperm.xlu1 %467, %v293_v28  }
  0x36   :  { %460 = vmatpush.xpose.msk.msra.mxu3 %vm67_vm0, %v25_v27  ;;  %459 = vmatpush.xpose.msk.msra.mxu2 %vm67_vm0, %v25_v27 }
  0x37   :  { %418 = vmatpush.xpose.msk.msra.mxu0 %vm67_vm0, %v25_v27  ;;  %301 = vperm.xlu2 %468, %v291_v58  }
  0x3a   :  { %462 = vmatpush.xpose.msk.msra.mxu3 %vm67_vm0, %v24_v29  ;;  %461 = vmatpush.xpose.msk.msra.mxu2 %vm67_vm0, %v24_v29 }
  0x3b   :  { %419 = vmatpush.xpose.msk.msra.mxu0 %vm67_vm0, %v24_v29 }
  0x3c   :  { %359 = vperm.xlu0 %466, %v356_v30  }
  0x3e   :  { %464 = vmatpush.xpose.msk.msra.mxu3 %vm67_vm0, %v23_v31  ;;  %463 = vmatpush.xpose.msk.msra.mxu2 %vm67_vm0, %v23_v31 }
  0x3f   :  { %420 = vmatpush.xpose.msk.msra.mxu0 %vm67_vm0, %v23_v31  ;;  %316 = vperm.xlu2 %468, %v294_v62  }
  0x41   :  { %423 = vmatmul.msk.f32.vlgmr.msra.gmra.mxu3 %vm67_vm0, %v41_v32  ;;  %422 = vmatmul.msk.f32.vlgmr.msra.gmra.mxu2 %vm67_vm0, %v40_v33 }
  0x42   :  { %421 = vmatmul.msk.f32.vlgmr.msra.gmra.mxu0 %vm67_vm0, %v39_v34 }
  0x49   :  { %424 = vmatmul.msk.f32.gmra.mxu3 %vm67_vm0, %v42_v35 }
  0x69   :  { %v180_v3 = vpop.permute.xlu2 %179 }
  0x71   :  { %v185_v4 = vpop.permute.xlu2 %184 }
  0x76   :  { %v65_v38 = vpop.permute.xlu0 %64  ;;  %v55_v41 = vpop.permute.xlu1 %54 }
  0x79   :  { %v210_v7 = vpop.permute.xlu2 %209 }
  0x7e   :  { %v60_v42 = vpop.permute.xlu0 %59  ;;  %v50_v51 = vpop.permute.xlu1 %49 }
  0x81   :  { %v327_v10 = vpop.permute.xlu2 %326 }
  0x86   :  { %v200_v5 = vpop.permute.xlu0 %199  ;;  %v205_v6 = vpop.permute.xlu1 %204 }
  0x89   :  { %v376_v13 = vpop.permute.xlu2 %375 }
  0x8e   :  { %v215_v8 = vpop.permute.xlu0 %214  ;;  %v322_v9 = vpop.permute.xlu1 %321 }
  0x91   :  { %v302_v21 = vpop.permute.xlu2 %301 }
  0x96   :  { %v332_v11 = vpop.permute.xlu0 %331  ;;  %v337_v12 = vpop.permute.xlu1 %336 }
  0x9e   :  { %v190_v15 = vpop.permute.xlu0 %189  ;;  %v195_v20 = vpop.permute.xlu1 %194 }
  0xa6   :  { %v307_v23 = vpop.permute.xlu0 %306  ;;  %v312_v30 = vpop.permute.xlu1 %311 }
  0xbf   :  { %v145_v48 = vpop.f32.mrf.mxu0 }
  0xc0   :  { %v146_v53 = vadd.f32 %v145_v48, %v50_v51 }
  0xc2   :  { %v157_v56 = vmax.f32 %v146_v53, 0.0 }
  0xc4   :  { %v151_v40 = vpop.f32.mrf.mxu3  ;;  %v148_v44 = vpop.f32.mrf.mxu2 }
  0xc5   :  { %v152_v46 = vadd.f32 %v151_v40, %v60_v42  ;;  %v149_v49 = vadd.f32 %v148_v44, %v55_v41 }
  0xc7   :  { %v159_v52 = vmax.f32 %v152_v46, 0.0  ;;  %v158_v54 = vmax.f32 %v149_v49, 0.0 }
  0xcc   :  { %v154_v45 = vpop.f32.mrf.mxu3 }
  0xcd   :  { %v155_v47 = vadd.f32 %v154_v45, %v65_v38 }
  0xcf   :  { %v160_v50 = vmax.f32 %v155_v47, 0.0 }
  0xd1   :  { %254 = vmatpush.msra.mxu1 %v160_v50 }
  0xd3   :  { %255 = vmatpush.msra.mxu1 %v159_v52 }
  0xd5   :  { %256 = vmatpush.msra.mxu1 %v158_v54 }
  0xd7   :  { %257 = vmatpush.msra.mxu1 %v157_v56 }
  0xd8   :  { %425 = vmatmul.msk.f32.vlgmr.msra.gmra.mxu1 %vm217_vm1, %v161_v57 }
  0xe0   :  { %426 = vmatmul.msk.f32.gmra.mxu1 %vm217_vm1, %v162_v59  ;;  %v317_v59 = vpop.permute.xlu2 %316 }
  0xe8   :  { %427 = vmatmul.msk.f32.gmra.mxu1 %vm217_vm1, %v163_v60 }
  0xf0   :  { %428 = vmatmul.msk.f32.gmra.mxu1 %vm217_vm1, %v164_v61 }
  0xf8   :  { %429 = vmatmul.msk.f32.gmra.mxu1 %vm217_vm1, %v165_v63 }
 0x100   :  { %430 = vmatmul.msk.f32.gmra.mxu1 %vm217_vm1, %v166_v0 }
 0x108   :  { %431 = vmatmul.msk.f32.gmra.mxu1 %vm217_vm1, %v167_v1 }
 0x110   :  { %432 = vmatmul.msk.f32.gmra.mxu1 %vm217_vm1, %v168_v2 }
 0x155   :  { %v259_v14 = vpop.f32.mrf.mxu1 }
 0x156   :  { %v260_v16 = vadd.f32 %v259_v14, %v180_v3 }
 0x158   :  { %v283_v18 = vmax.f32 %v260_v16, 0.0 }
 0x15a   :  { %v339_v24 = vmul.f32 %v302_v21, %v283_v18 }
 0x15d   :  { %v262_v17 = vpop.f32.mrf.mxu1 }
 0x15e   :  { %v263_v19 = vadd.f32 %v262_v17, %v185_v4 }
 0x160   :  { %v284_v22 = vmax.f32 %v263_v19, 0.0 }
 0x162   :  { %v340_v25 = vmul.f32 %v307_v23, %v284_v22  ;;  %v360_v22 = vpop.permute.xlu0 %359 }
 0x164   :  { %v347_v26 = vadd.f32 %v340_v25, %v339_v24 }
 0x165   :  { %v265_v27 = vpop.f32.mrf.mxu1 }
 0x166   :  { %v266_v28 = vadd.f32 %v265_v27, %v190_v15 }
 0x168   :  { %v285_v29 = vmax.f32 %v266_v28, 0.0 }
 0x16a   :  { %v341_v31 = vmul.f32 %v312_v30, %v285_v29 }
 0x16c   :  { %v348_v32 = vadd.f32 %v347_v26, %v341_v31 }
 0x16d   :  { %v268_v33 = vpop.f32.mrf.mxu1 }
 0x16e   :  { %v269_v55 = vadd.f32 %v268_v33, %v195_v20 }
 0x170   :  { %v286_v58 = vmax.f32 %v269_v55, 0.0 }
 0x172   :  { %v342_v62 = vmul.f32 %v317_v59, %v286_v58 }
 0x174   :  { %v349_v1 = vadd.f32 %v348_v32, %v342_v62 }
 0x175   :  { %v271_v34 = vpop.f32.mrf.mxu1 }
 0x176   :  { %v272_v38 = vadd.f32 %v271_v34, %v200_v5  ;;  %v350_v4 = vrot.slane %v349_v1, 4 }
 0x178   :  { %v287_v41 = vmax.f32 %v272_v38, 0.0  ;;  %v351_v5 = vadd.f32 %v350_v4, %v349_v1 }
 0x17a   :  { %v343_v45 = vmul.f32 %v322_v9, %v287_v41 }
 0x17d   :  { %v274_v35 = vpop.f32.mrf.mxu1 }
 0x17e   :  { %v275_v36 = vadd.f32 %v274_v35, %v205_v6 }
 0x180   :  { %v288_v40 = vmax.f32 %v275_v36, 0.0 }
 0x182   :  { %v344_v43 = vmul.f32 %v327_v10, %v288_v40 }
 0x184   :  { %v363_v48 = vadd.f32 %v344_v43, %v343_v45 }
 0x185   :  { %v277_v37 = vpop.f32.mrf.mxu1 }
 0x186   :  { %v278_v39 = vadd.f32 %v277_v37, %v210_v7  ;;  %v352_v7 = vrot.slane %v351_v5, 2 }
 0x188   :  { %v289_v42 = vmax.f32 %v278_v39, 0.0  ;;  %v353_v10 = vadd.f32 %v352_v7, %v351_v5 }
 0x18a   :  { %v345_v46 = vmul.f32 %v332_v11, %v289_v42  ;;  %v354_v15 = vrot.slane %v353_v10, 1 }
 0x18c   :  { %v364_v50 = vadd.f32 %v363_v48, %v345_v46  ;;  %v355_v19 = vadd.f32 %v354_v15, %v353_v10 }
 0x18d   :  { %v280_v44 = vpop.f32.mrf.mxu1 }
 0x18e   :  { %v281_v47 = vadd.f32 %v280_v44, %v215_v8  ;;  %v362_v23 = vadd.f32 %v360_v22, %v355_v19 }
 0x190   :  { %v290_v49 = vmax.f32 %v281_v47, 0.0 }
 0x192   :  { %v346_v51 = vmul.f32 %v337_v12, %v290_v49 }
 0x194   :  { %v365_v52 = vadd.f32 %v364_v50, %v346_v51 }
 0x196   :  { %v366_v53 = vrot.slane %v365_v52, 4 }
 0x198   :  { %v367_v54 = vadd.f32 %v366_v53, %v365_v52 }
 0x19a   :  { %v368_v56 = vrot.slane %v367_v54, 2 }
 0x19c   :  { %v369_v57 = vadd.f32 %v368_v56, %v367_v54 }
 0x19e   :  { %v370_v60 = vrot.slane %v369_v57, 1 }
 0x1a0   :  { %v371_v61 = vadd.f32 %v370_v60, %v369_v57 }
 0x1a2   :  { %v378_v63 = vadd.f32 %v376_v13, %v371_v61 }
 0x1a4   :  { %v380_v0 = vand.u32 2147483647, %v378_v63  ;;  %v379_v13 = vmax.f32 %v378_v63, 0.0 }
 0x1a6   :  { %v381_v2 = vsub.f32 0.0, %v380_v0 }
 0x1a8   :  { %v382_v3 = vmul.f32 1.442695, %v381_v2 }
 0x1aa   :  { %469 = vpow2.f32 %v382_v3 }
 0x1b0   :  { %v470_v6 = vpop.eup %469 }
 0x1b1   :  { %v384_v8 = vadd.f32 1.0, %v470_v6  ;;  %v387_v9 = vmul.f32 -0.5, %v470_v6  ;;  %v390_v12 = vand.u32 2147483647, %v470_v6 }
 0x1b3   :  { %471 = vlog2.f32 %v384_v8  ;;  %v388_v11 = vadd.f32 1.0, %v387_v9  ;;  %vm391_vm2 = vcmp.lt.f32.partialorder %v390_v12, 0.0004427343 }
 0x1b5   :  { %v389_v17 = vmul.f32 %v470_v6, %v388_v11 }
 0x1b9   :  { %v472_v14 = vpop.eup %471 }
 0x1ba   :  { %v386_v16 = vmul.f32 0.6931472, %v472_v14 }
 0x1bc   :  { %v392_v18 = vsel %vm391_vm2, %v389_v17, %v386_v16 }
 0x1bd   :  { %v393_v20 = vadd.f32 %v392_v18, %v379_v13 }
 0x1bf   :  { %v394_v21 = vadd.f32 1e-06, %v393_v20 }
 0x1c1   :  { %v396_v24 = vrot.slane %v394_v21, 7 }
 0x1c3   :  { %v399_v25 = vsel %vm398_vm3, %v362_v23, %v396_v24 }
 0x1c4   :  { %400 = vst [vmem:[%s728_s6] sm:$0x3] %v399_v25 }

</bundles_post_ra>
